<compile_context>
chip_gen: v7x
topology: tpu7x:2x2x1
jax: 0.10.0
libtpu: 0.0.40
codegen_flags: <defaults>
</compile_context>

<pallas_src>
import functools
import math

import jax
import jax.numpy as jnp
from jax import lax
from jax.experimental import pallas as pl
from jax.experimental.pallas import tpu as pltpu

STATE_DIM = 4
HIDDEN = 64
H2 = HIDDEN // 2        # 32
BN_EPS = 1e-5
SUB = 128               # inner sub-chunk width (one vreg lane row)

# Packed parameter buffer layout (f32, shape (P_ROWS, 128)); every vector that is
# broadcast across the batch/lane axis is stored already replicated to 128 lanes.
P_COLS = 128
R_W1 = 0                             # rows [64*k, 64*(k+1)) = W1[:, k] replicated
R_B1 = R_W1 + STATE_DIM * HIDDEN     # 256: b1 replicated
R_W2 = R_B1 + HIDDEN                 # 320: W2' (BN1 folded), lanes 0:64
R_B2 = R_W2 + H2                     # 352: b2' replicated
R_W3 = R_B2 + H2                     # 384: w3' (BN2 folded) replicated
R_B3 = R_W3 + H2                     # 416: b3' replicated
P_ROWS = ((R_B3 + 1 + 7) // 8) * 8   # 424 (multiple of 8 sublanes)

FLOPS_PER_SAMPLE = 2 * (STATE_DIM * HIDDEN + HIDDEN * H2 + H2)  # 4672
BYTES_PER_SAMPLE = STATE_DIM * 4 + 4                            # 20


def _cdiv(a, b):
    return -(-a // b)


def _round_up(x, m):
    return (x + m - 1) // m * m


def reward_mlp_kernel(x_ref, p_ref, out_ref):
    """Fused eval-mode forward for one (features, batch-tile) block.

    x_ref:   (STATE_DIM, TB)  feature-major activations, batch on lanes.
    p_ref:   (P_ROWS, 128)    packed, lane-replicated parameters.
    out_ref: (1, TB)          rewards, lane-dense.
    """
    n_chunks = out_ref.shape[-1] // SUB   # TB is a multiple of 128

    def chunk(c, carry):
        col = pl.multiple_of(c * SUB, SUB)
        x = x_ref[:, pl.ds(col, SUB)]                             # (4, 128)

        # Layer 1: Linear(4 -> 64) + ReLU.  K=4 would waste the MXU; do 4 VPU
        # rank-1 updates.  Params are pre-replicated -> plain (64,128) loads.
        h1 = p_ref[R_B1:R_B1 + HIDDEN, :]                         # (64, 128)
        for k in range(STATE_DIM):
            w1k = p_ref[R_W1 + k * HIDDEN:R_W1 + (k + 1) * HIDDEN, :]
            h1 = h1 + w1k * x[k:k + 1, :]
        h1 = jnp.maximum(h1, 0.0)
        # BatchNorm1d(64) (eval) folded into W2'/b2'; Dropout(0.2) identity in eval.

        # Layer 2: Linear(64 -> 32) + ReLU on the MXU (K=64 contraction).
        w2 = p_ref[R_W2:R_W2 + H2, 0:HIDDEN]                      # (32, 64)
        h2 = jnp.dot(w2, h1, preferred_element_type=jnp.float32)
        h2 = jnp.maximum(h2 + p_ref[R_B2:R_B2 + H2, :], 0.0)      # (32, 128)
        # BatchNorm1d(32) (eval) folded into w3'/b3'; Dropout(0.1) identity in eval.

        # Layer 3: Linear(32 -> 1).  N=1 would waste the MXU; multiply + sublane
        # reduce.  Output row is lane-dense -> unmasked store.
        r = jnp.sum(h2 * p_ref[R_W3:R_W3 + H2, :], axis=0, keepdims=True)
        out_ref[:, pl.ds(col, SUB)] = r + p_ref[R_B3:R_B3 + 1, :]
        return carry

    # Partially-unrolled inner loop bounds vreg live ranges per 128-lane chunk
    # while giving the LLO scheduler a few bodies to interleave.
    lax.fori_loop(0, n_chunks, chunk, 0, unroll=min(4, n_chunks))


def _forward_feature_major(x_fm, packed_params, *, block_b):
    """Core: x_fm (STATE_DIM, B) feature-major -> (1, B) rewards."""
    x_fm = x_fm.astype(jnp.float32)
    B = x_fm.shape[1]

    # Tiny batches (< 128 lanes) are padded up to one tile; otherwise no padding:
    # the ragged last tile is handled by Pallas's masked block reads/writes.
    b_eff = max(B, SUB)
    if b_eff != B:
        x_fm = jnp.pad(x_fm, ((0, 0), (0, b_eff - B)))

    block_b = _round_up(max(int(block_b), SUB), SUB)          # lane-aligned tile
    # Aim for >= 2 grid steps so v7x's two TensorCores both get work
    # (harmless no-op on single-core v5e/v6e).
    tb = max(SUB, min(block_b, _round_up(_cdiv(b_eff, 2), SUB)))
    grid = (pl.cdiv(b_eff, tb),)

    out = pl.pallas_call(
        reward_mlp_kernel,
        out_shape=jax.ShapeDtypeStruct((1, b_eff), jnp.float32),
        grid=grid,
        in_specs=[
            pl.BlockSpec((STATE_DIM, tb), lambda i: (0, i)),      # streamed batch tile
            pl.BlockSpec((P_ROWS, P_COLS), lambda i: (0, 0)),     # params: DMA'd once
        ],
        out_specs=pl.BlockSpec((1, tb), lambda i: (0, i)),
        compiler_params=pltpu.CompilerParams(
            dimension_semantics=("parallel",),
        ),
        cost_estimate=pl.CostEstimate(
            flops=FLOPS_PER_SAMPLE * b_eff,
            transcendentals=0,
            bytes_accessed=BYTES_PER_SAMPLE * b_eff + P_ROWS * P_COLS * 4,
        ),
    )(x_fm, packed_params)
    return out[:, :B]


@functools.partial(jax.jit, static_argnames=("block_b",))
def reward_model_forward_feature_major(x_fm, packed_params, *, block_b=8192):
    """Fast path: x_fm (state_dim, B) feature-major -> (B, 1).  No wrapper transpose."""
    return jnp.reshape(_forward_feature_major(x_fm, packed_params, block_b=block_b), (-1, 1))


@functools.partial(jax.jit, static_argnames=("block_b",))
def reward_model_forward(state, packed_params, *, block_b=8192):
    """Module-compatible entry: state (B, state_dim) -> (B, 1), eval-mode forward."""
    # One fused transpose pass (no separate pad pass).  Producers that can supply
    # feature-major (state_dim, B) should call reward_model_forward_feature_major
    # and skip this extra HBM pass entirely.
    x_fm = jnp.transpose(state.astype(jnp.float32))               # (4, B)
    return jnp.reshape(_forward_feature_major(x_fm, packed_params, block_b=block_b), (-1, 1))


def init_torch_params(key, state_dim=STATE_DIM, hidden_dim=HIDDEN):
    """Replicates PyTorch init: xavier_normal_(gain=0.5), bias -0.02 / 0, fresh BN."""
    h2 = hidden_dim // 2
    k1, k2, k3 = jax.random.split(key, 3)

    def xavier(k, fan_out, fan_in, gain=0.5):
        std = gain * math.sqrt(2.0 / (fan_in + fan_out))
        return std * jax.random.normal(k, (fan_out, fan_in), dtype=jnp.float32)

    def bn(dim):  # gamma, beta, running_mean, running_var
        return (jnp.ones((dim,), jnp.float32), jnp.zeros((dim,), jnp.float32),
                jnp.zeros((dim,), jnp.float32), jnp.ones((dim,), jnp.float32))

    return dict(
        w1=xavier(k1, hidden_dim, state_dim), b1=jnp.zeros((hidden_dim,), jnp.float32),
        bn1=bn(hidden_dim),
        w2=xavier(k2, h2, hidden_dim), b2=jnp.zeros((h2,), jnp.float32),
        bn2=bn(h2),
        w3=xavier(k3, 1, h2), b3=jnp.full((1,), -0.02, jnp.float32),
    )


def randomize_bn_stats(tp, key):
    """Non-trivial BN running stats / affines so the folding math is exercised."""
    ks = jax.random.split(key, 8)

    def rbn(dim, k4):
        g = 1.0 + 0.2 * jax.random.normal(k4[0], (dim,), jnp.float32)
        b = 0.1 * jax.random.normal(k4[1], (dim,), jnp.float32)
        m = 0.3 * jax.random.normal(k4[2], (dim,), jnp.float32)
        v = jax.random.uniform(k4[3], (dim,), jnp.float32, minval=0.5, maxval=1.5)
        return (g, b, m, v)

    tp = dict(tp)
    tp["bn1"] = rbn(HIDDEN, ks[0:4])
    tp["bn2"] = rbn(H2, ks[4:8])
    return tp


def fold_and_pack_params(tp):
    """Fold eval-mode BN affines into the next Linear and pack (lane-replicated)."""
    g1, be1, m1, v1 = tp["bn1"]
    g2, be2, m2, v2 = tp["bn2"]
    s1 = g1 / jnp.sqrt(v1 + BN_EPS)
    t1 = be1 - m1 * s1
    s2 = g2 / jnp.sqrt(v2 + BN_EPS)
    t2 = be2 - m2 * s2

    w2f = tp["w2"] * s1[None, :]                  # (32, 64)
    b2f = tp["b2"] + tp["w2"] @ t1                # (32,)
    w3f = tp["w3"] * s2[None, :]                  # (1, 32)
    b3f = tp["b3"] + tp["w3"] @ t2                # (1,)

    def rep(v):  # (n,) -> (n, 128) replicated across lanes
        return jnp.tile(jnp.asarray(v, jnp.float32).reshape(-1, 1), (1, P_COLS))

    p = jnp.zeros((P_ROWS, P_COLS), jnp.float32)
    for k in range(STATE_DIM):
        p = p.at[R_W1 + k * HIDDEN:R_W1 + (k + 1) * HIDDEN, :].set(rep(tp["w1"][:, k]))
    p = p.at[R_B1:R_B1 + HIDDEN, :].set(rep(tp["b1"]))
    p = p.at[R_W2:R_W2 + H2, 0:HIDDEN].set(w2f.astype(jnp.float32))
    p = p.at[R_B2:R_B2 + H2, :].set(rep(b2f))
    p = p.at[R_W3:R_W3 + H2, :].set(rep(w3f[0]))
    p = p.at[R_B3:R_B3 + 1, :].set(rep(b3f))
    return p


def reference_forward(state, tp):
    """Plain-JAX eval-mode reference using the UNfolded parameters."""
    hi = jax.lax.Precision.HIGHEST
    g1, be1, m1, v1 = tp["bn1"]
    g2, be2, m2, v2 = tp["bn2"]
    h = jnp.maximum(jnp.dot(state, tp["w1"].T, precision=hi) + tp["b1"], 0.0)
    h = (h - m1) / jnp.sqrt(v1 + BN_EPS) * g1 + be1
    h = jnp.maximum(jnp.dot(h, tp["w2"].T, precision=hi) + tp["b2"], 0.0)
    h = (h - m2) / jnp.sqrt(v2 + BN_EPS) * g2 + be2
    return jnp.dot(h, tp["w3"].T, precision=hi) + tp["b3"]

# TODO(synk): training-mode dropout masks and BatchNorm batch-statistics /
# running-stat updates are not reproduced (eval-mode forward only).


if __name__ == "__main__":
    key = jax.random.PRNGKey(0)
    k_param, k_state1, k_state2, k_bn = jax.random.split(key, 4)

    torch_params = init_torch_params(k_param)

    # Test 1: small batch, freshly-initialized BN stats (single, partial tile).
    B1 = 8
    state1 = jax.random.normal(k_state1, (B1, STATE_DIM), dtype=jnp.float32)
    packed1 = fold_and_pack_params(torch_params)
    out1 = jax.block_until_ready(reward_model_forward(state1, packed1))
    ref1 = reference_forward(state1, torch_params)
    assert out1.shape == (B1, 1), out1.shape
    # Tolerance allows for the MXU's f32 multi-pass path vs. the HIGHEST-precision
    # reference; real layout / BN-folding bugs produce errors orders of magnitude larger.
    err1 = float(jnp.max(jnp.abs(out1 - ref1)))
    assert jnp.allclose(out1, ref1, atol=2e-3, rtol=2e-3), ("test1 max abs err", err1)

    # Test 2: non-trivial BN running stats (exercises the folding math), ragged
    # last tile and a 2-step grid (both TensorCores on v7x).
    tp2 = randomize_bn_stats(torch_params, k_bn)
    packed2 = fold_and_pack_params(tp2)
    B2 = 200
    state2 = jax.random.normal(k_state2, (B2, STATE_DIM), dtype=jnp.float32)
    out2 = jax.block_until_ready(reward_model_forward(state2, packed2))
    ref2 = reference_forward(state2, tp2)
    assert out2.shape == (B2, 1), out2.shape
    err2 = float(jnp.max(jnp.abs(out2 - ref2)))
    assert jnp.allclose(out2, ref2, atol=2e-3, rtol=2e-3), ("test2 max abs err", err2)

    print("KERNEL_OK")
</pallas_src>

<mosaic_0001>
module attributes {stable_mosaic.version = 11 : i64} {
  func.func @reward_mlp_kernel(%arg0: i32, %arg1: memref<4x128xf32, #tpu.memory_space<vmem>>, %arg2: memref<424x128xf32, #tpu.memory_space<vmem>>, %arg3: memref<1x128xf32, #tpu.memory_space<vmem>>) attributes {dimension_semantics = [#tpu.dimension_semantics<parallel>], iteration_bounds = array<i64: 1>, scalar_prefetch = 0 : i64, scratch_operands = 0 : i64, tpu.core_type = #tpu.core_type<tc>, window_params = [{transform_indices = @transform_0, window_bounds = array<i64: 4, 128>}, {pipeline_mode = #tpu.pipeline_mode<synchronous>, transform_indices = @transform_1, window_bounds = array<i64: 424, 128>}, {transform_indices = @transform_2, window_bounds = array<i64: 1, 128>}]} {
    %c0_i32 = arith.constant 0 : i32
    %c128_i32 = arith.constant 128 : i32
    %0 = arith.muli %c0_i32, %c128_i32 : i32
    %1 = tpu.assume_multiple %0, 128 : i32
    %c0 = arith.constant 0 : index
    %2 = arith.index_cast %1 : i32 to index
    %3 = vector.load %arg1[%c0, %2] : memref<4x128xf32, #tpu.memory_space<vmem>>, vector<4x128xf32>
    %c256 = arith.constant 256 : index
    %c0_0 = arith.constant 0 : index
    %4 = vector.load %arg2[%c256, %c0_0] : memref<424x128xf32, #tpu.memory_space<vmem>>, vector<64x128xf32>
    %c0_1 = arith.constant 0 : index
    %c0_2 = arith.constant 0 : index
    %5 = vector.load %arg2[%c0_1, %c0_2] : memref<424x128xf32, #tpu.memory_space<vmem>>, vector<64x128xf32>
    %6 = vector.extract_strided_slice %3 {offsets = [0, 0], sizes = [1, 128], strides = [1, 1]} : vector<4x128xf32> to vector<1x128xf32>
    %7 = vector.broadcast %6 : vector<1x128xf32> to vector<64x128xf32>
    %8 = arith.mulf %5, %7 : vector<64x128xf32>
    %9 = arith.addf %4, %8 : vector<64x128xf32>
    %c64 = arith.constant 64 : index
    %c0_3 = arith.constant 0 : index
    %10 = vector.load %arg2[%c64, %c0_3] : memref<424x128xf32, #tpu.memory_space<vmem>>, vector<64x128xf32>
    %11 = vector.extract_strided_slice %3 {offsets = [1, 0], sizes = [1, 128], strides = [1, 1]} : vector<4x128xf32> to vector<1x128xf32>
    %12 = vector.broadcast %11 : vector<1x128xf32> to vector<64x128xf32>
    %13 = arith.mulf %10, %12 : vector<64x128xf32>
    %14 = arith.addf %9, %13 : vector<64x128xf32>
    %c128 = arith.constant 128 : index
    %c0_4 = arith.constant 0 : index
    %15 = vector.load %arg2[%c128, %c0_4] : memref<424x128xf32, #tpu.memory_space<vmem>>, vector<64x128xf32>
    %16 = vector.extract_strided_slice %3 {offsets = [2, 0], sizes = [1, 128], strides = [1, 1]} : vector<4x128xf32> to vector<1x128xf32>
    %17 = vector.broadcast %16 : vector<1x128xf32> to vector<64x128xf32>
    %18 = arith.mulf %15, %17 : vector<64x128xf32>
    %19 = arith.addf %14, %18 : vector<64x128xf32>
    %c192 = arith.constant 192 : index
    %c0_5 = arith.constant 0 : index
    %20 = vector.load %arg2[%c192, %c0_5] : memref<424x128xf32, #tpu.memory_space<vmem>>, vector<64x128xf32>
    %21 = vector.extract_strided_slice %3 {offsets = [3, 0], sizes = [1, 128], strides = [1, 1]} : vector<4x128xf32> to vector<1x128xf32>
    %22 = vector.broadcast %21 : vector<1x128xf32> to vector<64x128xf32>
    %23 = arith.mulf %20, %22 : vector<64x128xf32>
    %24 = arith.addf %19, %23 : vector<64x128xf32>
    %cst = arith.constant 0.000000e+00 : f32
    %25 = vector.broadcast %cst : f32 to vector<64x128xf32>
    %26 = arith.maximumf %24, %25 : vector<64x128xf32>
    %c320 = arith.constant 320 : index
    %c0_6 = arith.constant 0 : index
    %27 = vector.load %arg2[%c320, %c0_6] : memref<424x128xf32, #tpu.memory_space<vmem>>, vector<32x64xf32>
    %cst_7 = arith.constant dense<0.000000e+00> : vector<32x128xf32>
    %28 = tpu.matmul %27, %26, %cst_7 {dimension_numbers = #tpu.dot_dimension_numbers<[1], [0], [0], [1], [0, 0, 1, 1], [], []>} : vector<32x64xf32>, vector<64x128xf32>, vector<32x128xf32> -> vector<32x128xf32>
    %c352 = arith.constant 352 : index
    %c0_8 = arith.constant 0 : index
    %29 = vector.load %arg2[%c352, %c0_8] : memref<424x128xf32, #tpu.memory_space<vmem>>, vector<32x128xf32>
    %30 = arith.addf %28, %29 : vector<32x128xf32>
    %cst_9 = arith.constant 0.000000e+00 : f32
    %31 = vector.broadcast %cst_9 : f32 to vector<32x128xf32>
    %32 = arith.maximumf %30, %31 : vector<32x128xf32>
    %c384 = arith.constant 384 : index
    %c0_10 = arith.constant 0 : index
    %33 = vector.load %arg2[%c384, %c0_10] : memref<424x128xf32, #tpu.memory_space<vmem>>, vector<32x128xf32>
    %34 = arith.mulf %32, %33 : vector<32x128xf32>
    %cst_11 = arith.constant dense<0.000000e+00> : vector<128xf32>
    %35 = vector.multi_reduction <add>, %34, %cst_11 [0] : vector<32x128xf32> to vector<128xf32>
    %36 = vector.shape_cast %35 : vector<128xf32> to vector<1x128xf32>
    %c416 = arith.constant 416 : index
    %c0_12 = arith.constant 0 : index
    %37 = vector.load %arg2[%c416, %c0_12] : memref<424x128xf32, #tpu.memory_space<vmem>>, vector<1x128xf32>
    %38 = arith.addf %36, %37 : vector<1x128xf32>
    %c0_13 = arith.constant 0 : index
    %39 = arith.index_cast %1 : i32 to index
    %40 = vector.load %arg3[%c0_13, %39] : memref<1x128xf32, #tpu.memory_space<vmem>>, vector<1x128xf32>
    tpu.vector_store %arg3[%c0_13, %39], %38 {strides = array<i32>} : memref<1x128xf32, #tpu.memory_space<vmem>>, vector<1x128xf32>,
    %c1_i32 = arith.constant 1 : i32
    return
  }
  func.func @transform_0(%arg0: i32) -> (i32, i32) {
    %c0_i32 = arith.constant 0 : i32
    %c0_i32_0 = arith.constant 0 : i32
    return %c0_i32, %arg0 : i32, i32
  }
  func.func @transform_1(%arg0: i32) -> (i32, i32) {
    %c0_i32 = arith.constant 0 : i32
    %c0_i32_0 = arith.constant 0 : i32
    %c0_i32_1 = arith.constant 0 : i32
    return %c0_i32, %c0_i32_0 : i32, i32
  }
  func.func @transform_2(%arg0: i32) -> (i32, i32) {
    %c0_i32 = arith.constant 0 : i32
    %c0_i32_0 = arith.constant 0 : i32
    return %c0_i32, %arg0 : i32, i32
  }
}

</mosaic_0001>

<bundles_post_ra>
// kernel: reward_model_forward.1
= control target key start
LH: loop header
LB: loop body
LE: loop exit
PB: predicated region body
PF: predicated region fallthrough
CT: control target
= control target key end

     0   :  { %7 = vsyncpa [#allocation3], 0  ;;  %s378_s9 = smov [#allocation2]   ;;  %s458_s0 = inlined_call_operand.vmem [shape: f32[4,128], index: 0, kind: input, shape index: {}]   ;;  %s459_s1 = inlined_call_operand.hbm [shape: f32[424,128], index: 1, kind: input, shape index: {}]   ;;  %s460_s2 = inlined_call_operand.vmem [shape: f32[1,128], index: 2, kind: output, shape index: {}]  }
   0x1   :  { %s15_s10 = sshll.u32 %s378_s9, 4  ;;  %s354_s13 = scalar_lea.hbm %s459_s1, 6784  ;;  %s16_s10 = int_to_ptr.vmem [resolvable:$true] %s15_s10 }
   0x2   :  { %p355_p0 = scmp.ne.s32.totalorder %s459_s1, %s354_s13  ;;  %p358_p1 = scmp.lt.u32.totalorder %s354_s13, %s459_s1 }
   0x4   :  { %p360_p2 = pnand %p358_p1, %p355_p0 }
   0x6   :  { %363 = shalt.err (!%p360_p2)
}
   0x7   :  { %s364_s18 = scalar_lea.vmem %s16_s10, 6784  ;;  %p369_p4 = scmp.lt.s32.totalorder %s16_s10, %s16_s10 }
   0x8   :  { %p365_p3 = scmp.ne.s32.totalorder %s16_s10, %s364_s18  ;;  %p370_p5 = scmp.lt.s32.totalorder %s364_s18, %s364_s18 }
   0xa   :  { %p371_p6 = por %p370_p5, %p369_p4 }
   0xc   :  { %p372_p7 = pnand %p371_p6, %p365_p3 }
   0xe   :  { %375 = shalt.err (!%p372_p7)
}
   0xf   :  { %s379_s19 = smov 128   ;;  %s380_s20 = smov 8  }
  0x10   :  { %21 = dma.hbm_to_vmem [thread:$0]  %s459_s1, 6784, %s16_s10, [#allocation3], %s379_s19, %s379_s19, %s380_s20  }
  0x11   :  { %376 = dma.done.wait [#allocation3], 6784  }
  0x12   :  { %377 = vsyncadd [#allocation3], 4294960512  ;;  %v42_v0 = vlaneseq  ;;  %v25_v6 = vld [vmem:[%s458_s0] sm:$0xf]  ;;  %v27_v8 = vld [vmem:[#allocation2 + $0x108] sm:$0xff]  ;;  %vm162_vm0 = vcmask 523264  }
  0x13   :  { %v26_v7 = vld [vmem:[#allocation2 + $0x100] sm:$0xff]  ;;  %v35_v10 = vld [vmem:[#allocation2 + $0x8] sm:$0xff]  ;;  %v28_v25 = vld [vmem:[#allocation2 + $0x110] sm:$0xff] }
  0x14   :  { %v43_v1 = vshrl.u32 %v42_v0, 7  ;;  %v34_v9 = vld [vmem:[#allocation2] sm:$0xff]  ;;  %v63_v16 = vld [vmem:[#allocation2 + $0x48] sm:$0xff]  ;;  %v29_v29 = vld [vmem:[#allocation2 + $0x118] sm:$0xff] }
  0x15   :  { %v62_v12 = vld [vmem:[#allocation2 + $0x40] sm:$0xff]  ;;  %v91_v18 = vld [vmem:[#allocation2 + $0x88] sm:$0xff]  ;;  %v36_v30 = vld [vmem:[#allocation2 + $0x10] sm:$0xff] }
  0x16   :  { %v44_v2 = vsub.s32 0, %v43_v1  ;;  %v72_v3 = vsub.s32 1, %v43_v1  ;;  %v100_v4 = vsub.s32 2, %v43_v1  ;;  %v128_v5 = vsub.s32 3, %v43_v1  ;;  %v90_v17 = vld [vmem:[#allocation2 + $0x80] sm:$0xff]  ;;  %v119_v24 = vld [vmem:[#allocation2 + $0xc8] sm:$0xff] }
  0x17   :  { %v118_v23 = vld [vmem:[#allocation2 + $0xc0] sm:$0xff]  ;;  %v37_v31 = vld [vmem:[#allocation2 + $0x18] sm:$0xff]  ;;  %v64_v36 = vld [vmem:[#allocation2 + $0x50] sm:$0xff] }
  0x18   :  { %v411_v11 = vrot.slane %v25_v6, %v44_v2  ;;  %v413_v13 = vrot.slane %v25_v6, %v72_v3  ;;  %v415_v14 = vrot.slane %v25_v6, %v100_v4  ;;  %v417_v15 = vrot.slane %v25_v6, %v128_v5  ;;  %v65_v37 = vld [vmem:[#allocation2 + $0x58] sm:$0xff]  ;;  %v92_v38 = vld [vmem:[#allocation2 + $0x90] sm:$0xff]  ;;  %v30_v50 = vld [vmem:[#allocation2 + $0x120] sm:$0xff] }
  0x19   :  { %v93_v42 = vld [vmem:[#allocation2 + $0x98] sm:$0xff]  ;;  %v120_v44 = vld [vmem:[#allocation2 + $0xd0] sm:$0xff]  ;;  %v38_v51 = vld [vmem:[#allocation2 + $0x20] sm:$0xff] }
  0x1a   :  { %v46_v19 = vmul.f32 %v411_v11, %v34_v9  ;;  %v47_v20 = vmul.f32 %v411_v11, %v35_v10  ;;  %v74_v21 = vmul.f32 %v413_v13, %v62_v12  ;;  %v75_v22 = vmul.f32 %v413_v13, %v63_v16  ;;  %v121_v45 = vld [vmem:[#allocation2 + $0xd8] sm:$0xff]  ;;  %v39_v55 = vld [vmem:[#allocation2 + $0x28] sm:$0xff]  ;;  %v66_v57 = vld [vmem:[#allocation2 + $0x60] sm:$0xff] }
  0x1b   :  { %v102_v26 = vmul.f32 %v415_v14, %v90_v17  ;;  %v103_v27 = vmul.f32 %v415_v14, %v91_v18  ;;  %v130_v28 = vmul.f32 %v417_v15, %v118_v23  ;;  %v48_v34 = vmul.f32 %v411_v11, %v36_v30  ;;  %v67_v58 = vld [vmem:[#allocation2 + $0x68] sm:$0xff]  ;;  %v94_v0 = vld [vmem:[#allocation2 + $0xa0] sm:$0xff] }
  0x1c   :  { %v54_v32 = vadd.f32 %v46_v19, %v26_v7  ;;  %v55_v33 = vadd.f32 %v47_v20, %v27_v8  ;;  %v49_v35 = vmul.f32 %v411_v11, %v37_v31  ;;  %v131_v39 = vmul.f32 %v417_v15, %v119_v24  ;;  %v31_v63 = vld [vmem:[#allocation2 + $0x128] sm:$0xff]  ;;  %v122_v10 = vld [vmem:[#allocation2 + $0xe0] sm:$0xff]  ;;  %v40_v20 = vld [vmem:[#allocation2 + $0x30] sm:$0xff] }
  0x1d   :  { %v76_v40 = vmul.f32 %v413_v13, %v64_v36  ;;  %v77_v41 = vmul.f32 %v413_v13, %v65_v37  ;;  %v104_v43 = vmul.f32 %v415_v14, %v92_v38  ;;  %v56_v48 = vadd.f32 %v48_v34, %v28_v25  ;;  %v95_v1 = vld [vmem:[#allocation2 + $0xa8] sm:$0xff]  ;;  %v41_v25 = vld [vmem:[#allocation2 + $0x38] sm:$0xff]  ;;  %v156_v34 = vld [vmem:[#allocation2 + $0x150] sm:$0xff] }
  0x1e   :  { %v82_v46 = vadd.f32 %v74_v21, %v54_v32  ;;  %v83_v47 = vadd.f32 %v75_v22, %v55_v33  ;;  %v57_v49 = vadd.f32 %v49_v35, %v29_v29  ;;  %v105_v52 = vmul.f32 %v415_v14, %v93_v42  ;;  %v123_v12 = vld [vmem:[#allocation2 + $0xe8] sm:$0xff]  ;;  %v32_v32 = vld [vmem:[#allocation2 + $0x130] sm:$0xff]  ;;  %v69_v33 = vld [vmem:[#allocation2 + $0x78] sm:$0xff]  ;;  %324 = vmatprep.mubr.msk.f32.mxu1 %vm162_vm0, %v156_v34 }
  0x1f   :  { %v132_v53 = vmul.f32 %v417_v15, %v120_v44  ;;  %v133_v54 = vmul.f32 %v417_v15, %v121_v45  ;;  %v50_v56 = vmul.f32 %v411_v11, %v38_v51  ;;  %v84_v61 = vadd.f32 %v76_v40, %v56_v48  ;;  %v33_v38 = vld [vmem:[#allocation2 + $0x138] sm:$0xff]  ;;  %v96_v40 = vld [vmem:[#allocation2 + $0xb0] sm:$0xff] }
  0x20   :  { %v110_v59 = vadd.f32 %v102_v26, %v82_v46  ;;  %v111_v60 = vadd.f32 %v103_v27, %v83_v47  ;;  %v85_v62 = vadd.f32 %v77_v41, %v57_v49  ;;  %v51_v2 = vmul.f32 %v411_v11, %v39_v55  ;;  %v68_v26 = vld [vmem:[#allocation2 + $0x70] sm:$0xff]  ;;  %v154_v27 = vld [vmem:[#allocation2 + $0x140] sm:$0xff]  ;;  %v97_v45 = vld [vmem:[#allocation2 + $0xb8] sm:$0xff] }
  0x21   :  { %v58_v3 = vadd.f32 %v50_v56, %v30_v50  ;;  %v78_v4 = vmul.f32 %v413_v13, %v66_v57  ;;  %v79_v5 = vmul.f32 %v413_v13, %v67_v58  ;;  %v112_v8 = vadd.f32 %v104_v43, %v84_v61  ;;  %321 = vmatprep.mubr.msk.f32.mxu0 %vm162_vm0, %v154_v27  ;;  %v124_v46 = vld [vmem:[#allocation2 + $0xf0] sm:$0xff]  ;;  %v125_v50 = vld [vmem:[#allocation2 + $0xf8] sm:$0xff] }
  0x22   :  { %v138_v6 = vadd.f32 %v130_v28, %v110_v59  ;;  %v139_v7 = vadd.f32 %v131_v39, %v111_v60  ;;  %v113_v9 = vadd.f32 %v105_v52, %v85_v62  ;;  %v59_v16 = vadd.f32 %v51_v2, %v31_v63  ;;  %v155_v2 = vld [vmem:[#allocation2 + $0x148] sm:$0xff] }
  0x23   :  { %v86_v17 = vadd.f32 %v78_v4, %v58_v3  ;;  %v106_v18 = vmul.f32 %v415_v14, %v94_v0  ;;  %v107_v19 = vmul.f32 %v415_v14, %v95_v1  ;;  %v140_v23 = vadd.f32 %v132_v53, %v112_v8  ;;  %v159_v3 = vld [vmem:[#allocation2 + $0x168] sm:$0xff]  ;;  %v158_v4 = vld [vmem:[#allocation2 + $0x160] sm:$0xff] }
  0x24   :  { %v146_v21 = vmax.f32 %v138_v6, 0.0  ;;  %v147_v22 = vmax.f32 %v139_v7, 0.0  ;;  %v141_v24 = vadd.f32 %v133_v54, %v113_v9  ;;  %v87_v28 = vadd.f32 %v79_v5, %v59_v16  ;;  %v161_v5 = vld [vmem:[#allocation2 + $0x178] sm:$0xff]  ;;  %v160_v6 = vld [vmem:[#allocation2 + $0x170] sm:$0xff]  ;;  %v265_v16 = vld [vmem:[#allocation2 + $0x188] sm:$0xff] }
  0x25   :  { %v114_v29 = vadd.f32 %v106_v18, %v86_v17  ;;  %v134_v30 = vmul.f32 %v417_v15, %v122_v10  ;;  %v135_v31 = vmul.f32 %v417_v15, %v123_v12  ;;  %v148_v36 = vmax.f32 %v140_v23, 0.0 }
  0x26   :  { %v327_v35 = vpack.c.bf16 %v147_v22, %v146_v21  ;;  %v149_v37 = vmax.f32 %v141_v24, 0.0  ;;  %v52_v39 = vmul.f32 %v411_v11, %v40_v20  ;;  %v115_v41 = vadd.f32 %v107_v19, %v87_v28  ;;  %v264_v21 = vld [vmem:[#allocation2 + $0x180] sm:$0xff]  ;;  %v266_v22 = vld [vmem:[#allocation2 + $0x190] sm:$0xff] }
  0x27   :  { %v142_v42 = vadd.f32 %v134_v30, %v114_v29  ;;  %v53_v43 = vmul.f32 %v411_v11, %v41_v25  ;;  %v80_v44 = vmul.f32 %v413_v13, %v68_v26  ;;  %v81_v49 = vmul.f32 %v413_v13, %v69_v33  ;;  %v267_v29 = vld [vmem:[#allocation2 + $0x198] sm:$0xff] }
  0x28   :  { %328 = vmatprep.subr.bf16.mxu0 %v327_v35  ;;  %343 = vmatprep.subr.bf16.mxu1 %v327_v35  ;;  %v331_v47 = vpack.c.bf16 %v149_v37, %v148_v36  ;;  %v60_v48 = vadd.f32 %v52_v39, %v32_v32  ;;  %v143_v51 = vadd.f32 %v135_v31, %v115_v41  ;;  %v281_v39 = vld [vmem:[#allocation2 + $0x1a0] sm:$0x1] }
  0x29   :  { %330 = vmatpush3.bf16.msra.mxu0 %v327_v35  ;;  %347 = vmatpush3.bf16.msra.mxu1 %v327_v35  ;;  %v150_v52 = vmax.f32 %v142_v42, 0.0  ;;  %v61_v53 = vadd.f32 %v53_v43, %v33_v38  ;;  %v108_v54 = vmul.f32 %v415_v14, %v96_v40  ;;  %v109_v55 = vmul.f32 %v415_v14, %v97_v45 }
  0x2a   :  { %332 = vmatprep.subr.bf16.mxu0 %v331_v47  ;;  %344 = vmatprep.subr.bf16.mxu1 %v331_v47  ;;  %v88_v11 = vadd.f32 %v80_v44, %v60_v48  ;;  %v136_v56 = vmul.f32 %v417_v15, %v124_v46  ;;  %v151_v57 = vmax.f32 %v143_v51, 0.0  ;;  %v137_v59 = vmul.f32 %v417_v15, %v125_v50  ;;  %v157_v15 = vld [vmem:[#allocation2 + $0x158] sm:$0xff] }
  0x2b   :  { %v89_v58 = vadd.f32 %v81_v49, %v61_v53 }
  0x2c   :  { %v116_v13 = vadd.f32 %v108_v54, %v88_v11  ;;  %v335_v60 = vpack.c.bf16 %v151_v57, %v150_v52 }
  0x2d   :  { %334 = vmatpush3.bf16.msra.mxu0 %v331_v47  ;;  %348 = vmatpush3.bf16.msra.mxu1 %v331_v47  ;;  %v117_v61 = vadd.f32 %v109_v55, %v89_v58 }
  0x2e   :  { %v144_v62 = vadd.f32 %v136_v56, %v116_v13  ;;  %336 = vmatprep.subr.bf16.mxu0 %v335_v60  ;;  %345 = vmatprep.subr.bf16.mxu1 %v335_v60 }
  0x2f   :  { %v145_v63 = vadd.f32 %v137_v59, %v117_v61 }
  0x30   :  { %v152_v0 = vmax.f32 %v144_v62, 0.0 }
  0x31   :  { %338 = vmatpush3.bf16.msra.mxu0 %v335_v60  ;;  %349 = vmatpush3.bf16.msra.mxu1 %v335_v60  ;;  %v153_v1 = vmax.f32 %v145_v63, 0.0 }
  0x33   :  { %v339_v14 = vpack.c.bf16 %v153_v1, %v152_v0 }
  0x35   :  { %340 = vmatprep.subr.bf16.mxu0 %v339_v14  ;;  %346 = vmatprep.subr.bf16.mxu1 %v339_v14 }
  0x36   :  { %342 = vmatpush3.bf16.msra.mxu0 %v339_v14  ;;  %350 = vmatpush3.bf16.msra.mxu1 %v339_v14 }
  0x39   :  { %322 = vmatmul.mubr.msk.f32.vlgmr.msra.gmra.mrb[0].mxu0 %vm162_vm0, %v155_v2  ;;  %325 = vmatmul.mubr.msk.f32.vlgmr.msra.gmra.mrb[0].mxu1 %vm162_vm0, %v157_v15 }
 0x10c   :  { %v323_v7 = vpop.f32.mrb[0].mxu0  ;;  %v326_v8 = vpop.f32.mrb[0].mxu1 }
 0x10d   :  { %v247_v9 = vadd.f32 %v323_v7, %v159_v3  ;;  %v241_v10 = vpop.f32.mrb[1].mxu0  ;;  %v251_v12 = vpop.f32.mrb[1].mxu1  ;;  %v257_v18 = vadd.f32 %v326_v8, %v161_v5 }
 0x10e   :  { %v242_v17 = vadd.f32 %v241_v10, %v158_v4  ;;  %v252_v19 = vadd.f32 %v251_v12, %v160_v6 }
 0x10f   :  { %v261_v20 = vmax.f32 %v247_v9, 0.0  ;;  %v263_v27 = vmax.f32 %v257_v18, 0.0 }
 0x110   :  { %v260_v23 = vmax.f32 %v242_v17, 0.0  ;;  %v262_v24 = vmax.f32 %v252_v19, 0.0 }
 0x111   :  { %v269_v25 = vmul.f32 %v265_v16, %v261_v20  ;;  %v271_v31 = vmul.f32 %v267_v29, %v263_v27 }
 0x112   :  { %v268_v26 = vmul.f32 %v264_v21, %v260_v23  ;;  %v270_v28 = vmul.f32 %v266_v22, %v262_v24 }
 0x114   :  { %v272_v30 = vadd.f32 %v269_v25, %v268_v26 }
 0x116   :  { %v273_v32 = vadd.f32 %v272_v30, %v270_v28 }
 0x118   :  { %v274_v33 = vadd.f32 %v273_v32, %v271_v31 }
 0x11a   :  { %v275_v34 = vrot.slane %v274_v33, 4 }
 0x11c   :  { %v276_v35 = vadd.f32 %v275_v34, %v274_v33 }
 0x11e   :  { %v277_v36 = vrot.slane %v276_v35, 2 }
 0x120   :  { %v278_v37 = vadd.f32 %v277_v36, %v276_v35 }
 0x122   :  { %v279_v38 = vrot.slane %v278_v37, 1 }
 0x124   :  { %v280_v40 = vadd.f32 %v279_v38, %v278_v37 }
 0x126   :  { %v282_v41 = vadd.f32 %v281_v39, %v280_v40 }
 0x128   :  { %283 = vst [vmem:[%s460_s2] sm:$0x1] %v282_v41 }
 0x129   :  { %288 = vsyncpa [#allocation3], 1 }

</bundles_post_ra>
